<compile_context>
chip_gen: v7x
topology: tpu7x:2x2x1
jax: 0.10.0
libtpu: 0.0.40
codegen_flags: <defaults>
</compile_context>

<pallas_src>
import functools
import math

import jax
import jax.numpy as jnp
from jax.experimental import pallas as pl
from jax.experimental.pallas import tpu as pltpu

HIDDEN = 32
NUM_HEADS = 4
D_K = HIDDEN // NUM_HEADS
DROPOUT_PROB = 0.0   # eval mode / p = 0: dropout is the identity


def _mha_kernel(*refs, B, S, H, nh, dk, cd, has_mask):
    if has_mask:
        xq_ref, xk_ref, xv_ref, w_ref, b_ref, mask_ref, out_ref = refs
    else:
        xq_ref, xk_ref, xv_ref, w_ref, b_ref, out_ref = refs
        mask_ref = None

    n = nh * B
    inv_sqrt_dk = 1.0 / math.sqrt(dk)

    # Flatten (B, S, H) -> (B*S, H).  Cast matmul operands in-kernel (VPU op,
    # hidden under the MXU; avoids an extra HBM cast pass at the boundary).
    xq = xq_ref[...].reshape(B * S, H).astype(cd)
    xk = xk_ref[...].reshape(B * S, H).astype(cd)
    xv = xv_ref[...].reshape(B * S, H).astype(cd)

    # Dense 2-D projections: (B*S, H) @ (H, H), f32 accumulation, f32 bias.
    def proj(x, idx):
        w = w_ref[idx].astype(cd)
        return jnp.dot(x, w, preferred_element_type=jnp.float32) + b_ref[idx]

    q2 = proj(xq, 0)                                  # (B*S, H) f32
    k2 = proj(xk, 1)
    v2 = proj(xv, 2)

    # Split heads: static lane slices stacked on a new leading (head) axis
    # -> (nh*B, S, dk); batch order along the leading axis is (head, batch).
    def split_heads(x2):
        parts = [x2[:, h * dk:(h + 1) * dk] for h in range(nh)]
        return jnp.stack(parts, axis=0).reshape(n, S, dk)

    q = split_heads(q2).astype(cd)
    k = split_heads(k2).astype(cd)
    v = split_heads(v2).astype(cd)

    # Scores for all (head, batch) pairs in one batched contraction, f32.
    s = jnp.einsum('nqd,nkd->nqk', q, k,
                   preferred_element_type=jnp.float32) * inv_sqrt_dk

    # masked_fill(mask == 0, -1e9); mask broadcasts over (head, batch).
    s4 = s.reshape(nh, B, S, S)
    if has_mask:
        s4 = jnp.where(mask_ref[...] == 0, jnp.float32(-1e9), s4)

    # Numerically stable softmax with deferred normalization.
    m = jnp.max(s4, axis=-1, keepdims=True)
    p4 = jnp.exp(s4 - m)
    l4 = jnp.sum(p4, axis=-1, keepdims=True)
    p = p4.reshape(n, S, S)
    l = l4.reshape(n, S, 1)
    # dropout(p_attn) with p = 0 / eval mode is the identity.

    # Weighted sum, then one exact reciprocal per row instead of (S,S) divides.
    # (pl.reciprocal(..., approx=True) would push this to the EUP slot.)
    ctx = jnp.einsum('nqk,nkd->nqd', p.astype(cd), v,
                     preferred_element_type=jnp.float32)
    ctx = ctx * pl.reciprocal(l)

    # Concat heads on the lane axis -> (B*S, H), then one dense output proj
    # against the original Wo (contraction K = H = 32).
    ctx4 = ctx.reshape(nh, B, S, dk)
    ctx2 = jnp.concatenate([ctx4[h].reshape(B * S, dk) for h in range(nh)],
                           axis=-1)
    out = jnp.dot(ctx2.astype(cd), w_ref[3].astype(cd),
                  preferred_element_type=jnp.float32) + b_ref[3]
    out_ref[...] = out.reshape(B, S, H).astype(out_ref.dtype)


def mha_forward(query, key, value, params, mask=None,
                compute_dtype=jnp.float32):
    """Forward pass matching MultiHeadAttention.forward (eval mode).

    bf16 compute_dtype is safe on all TPU generations (v5e included): only the
    matmul operands are cast; accumulation and the softmax stay in float32.
    """
    B, S, H = query.shape
    assert H == HIDDEN and key.shape == (B, S, H) and value.shape == (B, S, H)
    nh, dk = NUM_HEADS, D_K

    wq, bq, wk, bk, wv, bv, wo, bo = params
    # Pack parameters into two dense inputs (fewer DMA descriptors/buffers).
    w_all = jnp.stack([wq, wk, wv, wo], axis=0)                   # (4, H, H)
    b_all = jnp.stack([bq.reshape(H), bk.reshape(H),
                       bv.reshape(H), bo.reshape(H)], axis=0)     # (4, H)

    has_mask = mask is not None
    args = [query, key, value, w_all, b_all]
    if has_mask:
        # Normalize to a compact (heads?, batch?, S, S) float32 mask (head-major
        # to match the kernel's (head, batch) score layout); the kernel
        # broadcasts it, so per-head masks are handled correctly.
        m = jnp.asarray(mask)
        if m.ndim == 2:            # (S, S): shared across batch and heads
            m = m[None, None]
        elif m.ndim == 3:          # (B, S, S): per-batch, shared across heads
            m = m[:, None]
        assert m.ndim == 4 and m.shape[-2:] == (S, S)
        assert m.shape[0] in (1, B) and m.shape[1] in (1, nh)
        m = jnp.swapaxes(m, 0, 1).astype(jnp.float32)
        args.append(m)
    # TODO(synk): for long sequences, generate structured (causal) masks
    # in-kernel from broadcasted_iota and add a KV-tiled online softmax instead
    # of materializing (heads, S, S) scores (needed before S ~ 1K on v7x).

    kernel = functools.partial(_mha_kernel, B=B, S=S, H=H, nh=nh, dk=dk,
                               cd=compute_dtype, has_mask=has_mask)

    return pl.pallas_call(
        kernel,
        out_shape=jax.ShapeDtypeStruct((B, S, H), jnp.float32),
        # Single invocation, no grid: whole-array blocks, VMEM-resident.
        # (Output last dim H=32 < 128 lanes -> masked stores; inherent to the
        # module's toy width.)
        in_specs=[pl.BlockSpec(memory_space=pltpu.MemorySpace.VMEM)
                  for _ in args],
        out_specs=pl.BlockSpec(memory_space=pltpu.MemorySpace.VMEM),
    )(*args)


def init_params(key, hidden):
    # nn.Linear default init: U(-1/sqrt(fan_in), 1/sqrt(fan_in)); weights stored
    # pre-transposed as (in, out) so y = x @ W + b.
    keys = jax.random.split(key, 8)
    bound = 1.0 / math.sqrt(hidden)
    params = []
    for i in range(4):
        w = jax.random.uniform(keys[2 * i], (hidden, hidden), jnp.float32,
                               -bound, bound)
        b = jax.random.uniform(keys[2 * i + 1], (1, hidden), jnp.float32,
                               -bound, bound)
        params += [w, b]
    return tuple(params)


def mha_reference(xq, xk, xv, params, mask=None):
    # Pure-JAX reference mirroring the PyTorch forward (eval mode).
    wq, bq, wk, bk, wv, bv, wo, bo = params
    B, S, H = xq.shape
    proj = lambda x, w, b: x @ w + b
    q = proj(xq, wq, bq).reshape(B, S, NUM_HEADS, D_K).transpose(0, 2, 1, 3)
    k = proj(xk, wk, bk).reshape(B, S, NUM_HEADS, D_K).transpose(0, 2, 1, 3)
    v = proj(xv, wv, bv).reshape(B, S, NUM_HEADS, D_K).transpose(0, 2, 1, 3)
    s = jnp.einsum('bhqd,bhkd->bhqk', q, k) / math.sqrt(D_K)
    if mask is not None:
        s = jnp.where(mask == 0, -1e9, s)   # mask broadcasts over (B, h, S, S)
    p = jax.nn.softmax(s, axis=-1)
    ctx = jnp.einsum('bhqk,bhkd->bhqd', p, v).transpose(0, 2, 1, 3).reshape(B, S, H)
    return ctx @ wo + bo


if __name__ == "__main__":
    B, S, H = 2, 8, HIDDEN
    key = jax.random.PRNGKey(0)
    kq, kk, kv, kp = jax.random.split(key, 4)

    xq = jax.random.normal(kq, (B, S, H), dtype=jnp.float32)
    xk = jax.random.normal(kk, (B, S, H), dtype=jnp.float32)
    xv = jax.random.normal(kv, (B, S, H), dtype=jnp.float32)
    params = init_params(kp, H)

    # Shared causal mask (nonzero == keep); stays VMEM-resident in the kernel.
    mask = jnp.tril(jnp.ones((S, S), dtype=jnp.float32))

    ref_masked = mha_reference(xq, xk, xv, params, mask=mask)
    ref_plain = mha_reference(xq, xk, xv, params, mask=None)

    # Float32 compute path, checked tightly.
    out = jax.block_until_ready(mha_forward(xq, xk, xv, params, mask=mask))
    assert out.shape == (B, S, H)
    assert jnp.allclose(out, ref_masked, atol=1e-4, rtol=1e-4), "f32 (masked) mismatch"

    out_nomask = jax.block_until_ready(mha_forward(xq, xk, xv, params, mask=None))
    assert jnp.allclose(out_nomask, ref_plain, atol=1e-4, rtol=1e-4), "f32 (no-mask) mismatch"

    # bf16 matmul operands (safe on v5e/v6e/v7x); f32 accumulation + softmax.
    out_bf16 = jax.block_until_ready(
        mha_forward(xq, xk, xv, params, mask=mask, compute_dtype=jnp.bfloat16))
    assert jnp.allclose(out_bf16, ref_masked, atol=5e-2, rtol=5e-2), "bf16 mismatch"

    # TODO(synk): dropout with p>0 (training mode) and the module's
    # self.attention_weights cache are not reproduced (eval-mode forward only).
    print("KERNEL_OK")
</pallas_src>

<mosaic_0001>
module attributes {stable_mosaic.version = 11 : i64} {
  func.func @_mha_kernel(%arg0: memref<2x8x32xf32, #tpu.memory_space<vmem>>, %arg1: memref<2x8x32xf32, #tpu.memory_space<vmem>>, %arg2: memref<2x8x32xf32, #tpu.memory_space<vmem>>, %arg3: memref<4x32x32xf32, #tpu.memory_space<vmem>>, %arg4: memref<4x32xf32, #tpu.memory_space<vmem>>, %arg5: memref<1x1x8x8xf32, #tpu.memory_space<vmem>>, %arg6: memref<2x8x32xf32, #tpu.memory_space<vmem>>) attributes {dimension_semantics = [], scalar_prefetch = 0 : i64, scratch_operands = 0 : i64, tpu.core_type = #tpu.core_type<tc>} {
    %c0 = arith.constant 0 : index
    %c0_0 = arith.constant 0 : index
    %c0_1 = arith.constant 0 : index
    %0 = vector.load %arg0[%c0, %c0_0, %c0_1] : memref<2x8x32xf32, #tpu.memory_space<vmem>>, vector<2x8x32xf32>
    %1 = vector.shape_cast %0 : vector<2x8x32xf32> to vector<16x32xf32>
    %c0_2 = arith.constant 0 : index
    %c0_3 = arith.constant 0 : index
    %c0_4 = arith.constant 0 : index
    %2 = vector.load %arg1[%c0_2, %c0_3, %c0_4] : memref<2x8x32xf32, #tpu.memory_space<vmem>>, vector<2x8x32xf32>
    %3 = vector.shape_cast %2 : vector<2x8x32xf32> to vector<16x32xf32>
    %c0_5 = arith.constant 0 : index
    %c0_6 = arith.constant 0 : index
    %c0_7 = arith.constant 0 : index
    %4 = vector.load %arg2[%c0_5, %c0_6, %c0_7] : memref<2x8x32xf32, #tpu.memory_space<vmem>>, vector<2x8x32xf32>
    %5 = vector.shape_cast %4 : vector<2x8x32xf32> to vector<16x32xf32>
    %c0_8 = arith.constant 0 : index
    %c0_9 = arith.constant 0 : index
    %c0_10 = arith.constant 0 : index
    %6 = vector.load %arg3[%c0_8, %c0_9, %c0_10] : memref<4x32x32xf32, #tpu.memory_space<vmem>>, vector<1x32x32xf32>
    %7 = vector.shape_cast %6 : vector<1x32x32xf32> to vector<32x32xf32>
    %cst = arith.constant dense<0.000000e+00> : vector<16x32xf32>
    %8 = tpu.matmul %1, %7, %cst {dimension_numbers = #tpu.dot_dimension_numbers<[1], [0], [0], [1], [0, 0, 1, 1], [], []>} : vector<16x32xf32>, vector<32x32xf32>, vector<16x32xf32> -> vector<16x32xf32>
    %c0_11 = arith.constant 0 : index
    %c0_12 = arith.constant 0 : index
    %9 = vector.load %arg4[%c0_11, %c0_12] : memref<4x32xf32, #tpu.memory_space<vmem>>, vector<1x32xf32>
    %10 = vector.shape_cast %9 : vector<1x32xf32> to vector<32xf32>
    %11 = vector.shape_cast %10 : vector<32xf32> to vector<1x32xf32>
    %12 = vector.broadcast %11 : vector<1x32xf32> to vector<16x32xf32>
    %13 = arith.addf %8, %12 : vector<16x32xf32>
    %c1 = arith.constant 1 : index
    %c0_13 = arith.constant 0 : index
    %c0_14 = arith.constant 0 : index
    %14 = vector.load %arg3[%c1, %c0_13, %c0_14] : memref<4x32x32xf32, #tpu.memory_space<vmem>>, vector<1x32x32xf32>
    %15 = vector.shape_cast %14 : vector<1x32x32xf32> to vector<32x32xf32>
    %cst_15 = arith.constant dense<0.000000e+00> : vector<16x32xf32>
    %16 = tpu.matmul %3, %15, %cst_15 {dimension_numbers = #tpu.dot_dimension_numbers<[1], [0], [0], [1], [0, 0, 1, 1], [], []>} : vector<16x32xf32>, vector<32x32xf32>, vector<16x32xf32> -> vector<16x32xf32>
    %c1_16 = arith.constant 1 : index
    %c0_17 = arith.constant 0 : index
    %17 = vector.load %arg4[%c1_16, %c0_17] : memref<4x32xf32, #tpu.memory_space<vmem>>, vector<1x32xf32>
    %18 = vector.shape_cast %17 : vector<1x32xf32> to vector<32xf32>
    %19 = vector.shape_cast %18 : vector<32xf32> to vector<1x32xf32>
    %20 = vector.broadcast %19 : vector<1x32xf32> to vector<16x32xf32>
    %21 = arith.addf %16, %20 : vector<16x32xf32>
    %c2 = arith.constant 2 : index
    %c0_18 = arith.constant 0 : index
    %c0_19 = arith.constant 0 : index
    %22 = vector.load %arg3[%c2, %c0_18, %c0_19] : memref<4x32x32xf32, #tpu.memory_space<vmem>>, vector<1x32x32xf32>
    %23 = vector.shape_cast %22 : vector<1x32x32xf32> to vector<32x32xf32>
    %cst_20 = arith.constant dense<0.000000e+00> : vector<16x32xf32>
    %24 = tpu.matmul %5, %23, %cst_20 {dimension_numbers = #tpu.dot_dimension_numbers<[1], [0], [0], [1], [0, 0, 1, 1], [], []>} : vector<16x32xf32>, vector<32x32xf32>, vector<16x32xf32> -> vector<16x32xf32>
    %c2_21 = arith.constant 2 : index
    %c0_22 = arith.constant 0 : index
    %25 = vector.load %arg4[%c2_21, %c0_22] : memref<4x32xf32, #tpu.memory_space<vmem>>, vector<1x32xf32>
    %26 = vector.shape_cast %25 : vector<1x32xf32> to vector<32xf32>
    %27 = vector.shape_cast %26 : vector<32xf32> to vector<1x32xf32>
    %28 = vector.broadcast %27 : vector<1x32xf32> to vector<16x32xf32>
    %29 = arith.addf %24, %28 : vector<16x32xf32>
    %30 = vector.extract_strided_slice %13 {offsets = [0, 0], sizes = [16, 8], strides = [1, 1]} : vector<16x32xf32> to vector<16x8xf32>
    %31 = vector.extract_strided_slice %13 {offsets = [0, 8], sizes = [16, 8], strides = [1, 1]} : vector<16x32xf32> to vector<16x8xf32>
    %32 = vector.extract_strided_slice %13 {offsets = [0, 16], sizes = [16, 8], strides = [1, 1]} : vector<16x32xf32> to vector<16x8xf32>
    %33 = vector.extract_strided_slice %13 {offsets = [0, 24], sizes = [16, 8], strides = [1, 1]} : vector<16x32xf32> to vector<16x8xf32>
    %34 = vector.shape_cast %30 : vector<16x8xf32> to vector<1x16x8xf32>
    %35 = vector.shape_cast %31 : vector<16x8xf32> to vector<1x16x8xf32>
    %36 = vector.shape_cast %32 : vector<16x8xf32> to vector<1x16x8xf32>
    %37 = vector.shape_cast %33 : vector<16x8xf32> to vector<1x16x8xf32>
    %38 = tpu.concatenate %34, %35, %36, %37 in 0 : vector<1x16x8xf32>, vector<1x16x8xf32>, vector<1x16x8xf32>, vector<1x16x8xf32> -> vector<4x16x8xf32>
    %39 = vector.shape_cast %38 : vector<4x16x8xf32> to vector<8x8x8xf32>
    %40 = vector.extract_strided_slice %21 {offsets = [0, 0], sizes = [16, 8], strides = [1, 1]} : vector<16x32xf32> to vector<16x8xf32>
    %41 = vector.extract_strided_slice %21 {offsets = [0, 8], sizes = [16, 8], strides = [1, 1]} : vector<16x32xf32> to vector<16x8xf32>
    %42 = vector.extract_strided_slice %21 {offsets = [0, 16], sizes = [16, 8], strides = [1, 1]} : vector<16x32xf32> to vector<16x8xf32>
    %43 = vector.extract_strided_slice %21 {offsets = [0, 24], sizes = [16, 8], strides = [1, 1]} : vector<16x32xf32> to vector<16x8xf32>
    %44 = vector.shape_cast %40 : vector<16x8xf32> to vector<1x16x8xf32>
    %45 = vector.shape_cast %41 : vector<16x8xf32> to vector<1x16x8xf32>
    %46 = vector.shape_cast %42 : vector<16x8xf32> to vector<1x16x8xf32>
    %47 = vector.shape_cast %43 : vector<16x8xf32> to vector<1x16x8xf32>
    %48 = tpu.concatenate %44, %45, %46, %47 in 0 : vector<1x16x8xf32>, vector<1x16x8xf32>, vector<1x16x8xf32>, vector<1x16x8xf32> -> vector<4x16x8xf32>
    %49 = vector.shape_cast %48 : vector<4x16x8xf32> to vector<8x8x8xf32>
    %50 = vector.extract_strided_slice %29 {offsets = [0, 0], sizes = [16, 8], strides = [1, 1]} : vector<16x32xf32> to vector<16x8xf32>
    %51 = vector.extract_strided_slice %29 {offsets = [0, 8], sizes = [16, 8], strides = [1, 1]} : vector<16x32xf32> to vector<16x8xf32>
    %52 = vector.extract_strided_slice %29 {offsets = [0, 16], sizes = [16, 8], strides = [1, 1]} : vector<16x32xf32> to vector<16x8xf32>
    %53 = vector.extract_strided_slice %29 {offsets = [0, 24], sizes = [16, 8], strides = [1, 1]} : vector<16x32xf32> to vector<16x8xf32>
    %54 = vector.shape_cast %50 : vector<16x8xf32> to vector<1x16x8xf32>
    %55 = vector.shape_cast %51 : vector<16x8xf32> to vector<1x16x8xf32>
    %56 = vector.shape_cast %52 : vector<16x8xf32> to vector<1x16x8xf32>
    %57 = vector.shape_cast %53 : vector<16x8xf32> to vector<1x16x8xf32>
    %58 = tpu.concatenate %54, %55, %56, %57 in 0 : vector<1x16x8xf32>, vector<1x16x8xf32>, vector<1x16x8xf32>, vector<1x16x8xf32> -> vector<4x16x8xf32>
    %59 = vector.shape_cast %58 : vector<4x16x8xf32> to vector<8x8x8xf32>
    "tpu.trace_start"() <{level = 10 : i32, message = "nqd,nkd->nqk"}> : () -> ()
    %cst_23 = arith.constant dense<0.000000e+00> : vector<8x8x8xf32>
    %60 = tpu.matmul %39, %49, %cst_23 {dimension_numbers = #tpu.dot_dimension_numbers<[2], [2], [1], [1], [0, 0, 0, 1, 1, 1], [0], [0]>} : vector<8x8x8xf32>, vector<8x8x8xf32>, vector<8x8x8xf32> -> vector<8x8x8xf32>
    "tpu.trace_stop"() : () -> ()
    %cst_24 = arith.constant 0.353553385 : f32
    %61 = vector.broadcast %cst_24 : f32 to vector<8x8x8xf32>
    %62 = arith.mulf %60, %61 : vector<8x8x8xf32>
    %63 = vector.shape_cast %62 : vector<8x8x8xf32> to vector<4x2x8x8xf32>
    %c0_25 = arith.constant 0 : index
    %c0_26 = arith.constant 0 : index
    %c0_27 = arith.constant 0 : index
    %c0_28 = arith.constant 0 : index
    %64 = vector.load %arg5[%c0_25, %c0_26, %c0_27, %c0_28] : memref<1x1x8x8xf32, #tpu.memory_space<vmem>>, vector<1x1x8x8xf32>
    %cst_29 = arith.constant 0.000000e+00 : f32
    %65 = vector.broadcast %cst_29 : f32 to vector<1x1x8x8xf32>
    %66 = arith.cmpf oeq, %64, %65 : vector<1x1x8x8xf32>
    %cst_30 = arith.constant -1.000000e+09 : f32
    %67 = vector.shape_cast %66 : vector<1x1x8x8xi1> to vector<1x1x8x8xi1>
    %68 = vector.broadcast %67 : vector<1x1x8x8xi1> to vector<4x2x8x8xi1>
    %69 = vector.broadcast %cst_30 : f32 to vector<4x2x8x8xf32>
    %70 = arith.select %68, %69, %63 : vector<4x2x8x8xi1>, vector<4x2x8x8xf32>
    %cst_31 = arith.constant dense<0xFF800000> : vector<4x2x8xf32>
    %71 = vector.multi_reduction <maximumf>, %70, %cst_31 [3] : vector<4x2x8x8xf32> to vector<4x2x8xf32>
    %72 = vector.shape_cast %71 : vector<4x2x8xf32> to vector<4x2x8x1xf32>
    %73 = vector.broadcast %72 : vector<4x2x8x1xf32> to vector<4x2x8x8xf32>
    %74 = arith.subf %70, %73 : vector<4x2x8x8xf32>
    %75 = math.exp %74 : vector<4x2x8x8xf32>
    %cst_32 = arith.constant dense<0.000000e+00> : vector<4x2x8xf32>
    %76 = vector.multi_reduction <add>, %75, %cst_32 [3] : vector<4x2x8x8xf32> to vector<4x2x8xf32>
    %77 = vector.shape_cast %76 : vector<4x2x8xf32> to vector<4x2x8x1xf32>
    %78 = vector.shape_cast %75 : vector<4x2x8x8xf32> to vector<8x8x8xf32>
    %79 = vector.shape_cast %77 : vector<4x2x8x1xf32> to vector<8x8x1xf32>
    "tpu.trace_start"() <{level = 10 : i32, message = "nqk,nkd->nqd"}> : () -> ()
    %cst_33 = arith.constant dense<0.000000e+00> : vector<8x8x8xf32>
    %80 = tpu.matmul %78, %59, %cst_33 {dimension_numbers = #tpu.dot_dimension_numbers<[2], [1], [1], [2], [0, 0, 0, 1, 1, 2], [0], [0]>} : vector<8x8x8xf32>, vector<8x8x8xf32>, vector<8x8x8xf32> -> vector<8x8x8xf32>
    "tpu.trace_stop"() : () -> ()
    %81 = tpu.reciprocal %79 : vector<8x8x1xf32> -> vector<8x8x1xf32>
    %82 = vector.broadcast %81 : vector<8x8x1xf32> to vector<8x8x8xf32>
    %83 = arith.mulf %80, %82 : vector<8x8x8xf32>
    %84 = vector.shape_cast %83 : vector<8x8x8xf32> to vector<4x2x8x8xf32>
    %85 = vector.extract_strided_slice %84 {offsets = [0, 0, 0, 0], sizes = [1, 2, 8, 8], strides = [1, 1, 1, 1]} : vector<4x2x8x8xf32> to vector<1x2x8x8xf32>
    %86 = vector.shape_cast %85 : vector<1x2x8x8xf32> to vector<2x8x8xf32>
    %87 = vector.shape_cast %86 : vector<2x8x8xf32> to vector<16x8xf32>
    %88 = vector.extract_strided_slice %84 {offsets = [1, 0, 0, 0], sizes = [1, 2, 8, 8], strides = [1, 1, 1, 1]} : vector<4x2x8x8xf32> to vector<1x2x8x8xf32>
    %89 = vector.shape_cast %88 : vector<1x2x8x8xf32> to vector<2x8x8xf32>
    %90 = vector.shape_cast %89 : vector<2x8x8xf32> to vector<16x8xf32>
    %91 = vector.extract_strided_slice %84 {offsets = [2, 0, 0, 0], sizes = [1, 2, 8, 8], strides = [1, 1, 1, 1]} : vector<4x2x8x8xf32> to vector<1x2x8x8xf32>
    %92 = vector.shape_cast %91 : vector<1x2x8x8xf32> to vector<2x8x8xf32>
    %93 = vector.shape_cast %92 : vector<2x8x8xf32> to vector<16x8xf32>
    %94 = vector.extract_strided_slice %84 {offsets = [3, 0, 0, 0], sizes = [1, 2, 8, 8], strides = [1, 1, 1, 1]} : vector<4x2x8x8xf32> to vector<1x2x8x8xf32>
    %95 = vector.shape_cast %94 : vector<1x2x8x8xf32> to vector<2x8x8xf32>
    %96 = vector.shape_cast %95 : vector<2x8x8xf32> to vector<16x8xf32>
    %97 = tpu.concatenate %87, %90, %93, %96 in 1 : vector<16x8xf32>, vector<16x8xf32>, vector<16x8xf32>, vector<16x8xf32> -> vector<16x32xf32>
    %c3 = arith.constant 3 : index
    %c0_34 = arith.constant 0 : index
    %c0_35 = arith.constant 0 : index
    %98 = vector.load %arg3[%c3, %c0_34, %c0_35] : memref<4x32x32xf32, #tpu.memory_space<vmem>>, vector<1x32x32xf32>
    %99 = vector.shape_cast %98 : vector<1x32x32xf32> to vector<32x32xf32>
    %cst_36 = arith.constant dense<0.000000e+00> : vector<16x32xf32>
    %100 = tpu.matmul %97, %99, %cst_36 {dimension_numbers = #tpu.dot_dimension_numbers<[1], [0], [0], [1], [0, 0, 1, 1], [], []>} : vector<16x32xf32>, vector<32x32xf32>, vector<16x32xf32> -> vector<16x32xf32>
    %c3_37 = arith.constant 3 : index
    %c0_38 = arith.constant 0 : index
    %101 = vector.load %arg4[%c3_37, %c0_38] : memref<4x32xf32, #tpu.memory_space<vmem>>, vector<1x32xf32>
    %102 = vector.shape_cast %101 : vector<1x32xf32> to vector<32xf32>
    %103 = vector.shape_cast %102 : vector<32xf32> to vector<1x32xf32>
    %104 = vector.broadcast %103 : vector<1x32xf32> to vector<16x32xf32>
    %105 = arith.addf %100, %104 : vector<16x32xf32>
    %106 = vector.shape_cast %105 : vector<16x32xf32> to vector<2x8x32xf32>
    %c0_39 = arith.constant 0 : index
    %c0_40 = arith.constant 0 : index
    %c0_41 = arith.constant 0 : index
    %107 = vector.load %arg6[%c0_39, %c0_40, %c0_41] : memref<2x8x32xf32, #tpu.memory_space<vmem>>, vector<2x8x32xf32>
    tpu.vector_store %arg6[%c0_39, %c0_40, %c0_41], %106 {strides = array<i32>} : memref<2x8x32xf32, #tpu.memory_space<vmem>>, vector<2x8x32xf32>,
    return
  }
}

</mosaic_0001>

<bundles_post_ra>
// kernel: tpu_custom_call.1
= control target key start
LH: loop header
LB: loop body
LE: loop exit
PB: predicated region body
PF: predicated region fallthrough
CT: control target
= control target key end

     0   :  { %11 = vsyncpa [#allocation3], 0  ;;  %s2551_s0 = inlined_call_operand.hbm [shape: f32[2,8,32], index: 0, kind: input, shape index: {}]   ;;  %s2552_s1 = inlined_call_operand.hbm [shape: f32[2,8,32], index: 1, kind: input, shape index: {}]   ;;  %s2553_s2 = inlined_call_operand.hbm [shape: f32[2,8,32], index: 2, kind: input, shape index: {}]   ;;  %s2554_s3 = inlined_call_operand.hbm [shape: f32[4,32,32], index: 3, kind: input, shape index: {}]   ;;  %s2555_s4 = inlined_call_operand.vmem [shape: f32[4,32], index: 4, kind: input, shape index: {}]   ;;  %s2556_s5 = inlined_call_operand.vmem [shape: f32[1,1,8,8], index: 5, kind: input, shape index: {}]   ;;  %s2557_s6 = inlined_call_operand.hbm [shape: f32[2,8,32], index: 6, kind: output, shape index: {}]  }
   0x1   :  { %12 = vsyncpa [#allocation6], 0 }
   0x2   :  { %13 = vsyncpa [#allocation9], 0 }
   0x3   :  { %14 = vsyncpa [#allocation4], 0  ;;  %s2247_s21 = smov [#allocation5]   ;;  %s2248_s23 = smov [#allocation2]  }
   0x4   :  { %s32_s22 = sshll.u32 %s2247_s21, 4  ;;  %s20_s24 = sshll.u32 %s2248_s23, 4  ;;  %s33_s22 = int_to_ptr.vmem [resolvable:$true] %s32_s22  ;;  %s2296_s24 = int_to_ptr.vmem [resolvable:$true] %s20_s24 }
   0x5   :  { %s2129_s27 = scalar_lea.hbm %s2552_s1, 256 }
   0x6   :  { %p2130_p0 = scmp.ne.s32.totalorder %s2552_s1, %s2129_s27  ;;  %p2133_p1 = scmp.lt.u32.totalorder %s2129_s27, %s2552_s1 }
   0x8   :  { %p2135_p2 = pnand %p2133_p1, %p2130_p0 }
   0xa   :  { %2138 = shalt.err (!%p2135_p2)
}
   0xb   :  { %s2139_s8 = scalar_lea.vmem %s33_s22, 256  ;;  %p2144_p4 = scmp.lt.s32.totalorder %s33_s22, %s33_s22 }
   0xc   :  { %p2140_p3 = scmp.ne.s32.totalorder %s33_s22, %s2139_s8  ;;  %p2145_p5 = scmp.lt.s32.totalorder %s2139_s8, %s2139_s8 }
   0xe   :  { %p2146_p6 = por %p2145_p5, %p2144_p4 }
  0x10   :  { %p2147_p7 = pnand %p2146_p6, %p2140_p3 }
  0x12   :  { %2150 = shalt.err (!%p2147_p7)
}
  0x13   :  { %s2249_s9 = smov 128   ;;  %s2250_s10 = smov 8  }
  0x14   :  { %38 = dma.hbm_to_vmem [thread:$0]  %s2552_s1, 256, %s33_s22, [#allocation6], %s2249_s9, %s2249_s9, %s2250_s10  }
  0x15   :  { %s2151_s15 = scalar_lea.hbm %s2551_s0, 256 }
  0x16   :  { %p2152_p8 = scmp.ne.s32.totalorder %s2551_s0, %s2151_s15  ;;  %p2155_p9 = scmp.lt.u32.totalorder %s2151_s15, %s2551_s0 }
  0x18   :  { %p2157_p10 = pnand %p2155_p9, %p2152_p8 }
  0x1a   :  { %2160 = shalt.err (!%p2157_p10)
}
  0x1b   :  { %s2161_s20 = scalar_lea.vmem %s2296_s24, 256  ;;  %p2166_p12 = scmp.lt.s32.totalorder %s2296_s24, %s2296_s24 }
  0x1c   :  { %p2162_p11 = scmp.ne.s32.totalorder %s2296_s24, %s2161_s20  ;;  %p2167_p13 = scmp.lt.s32.totalorder %s2161_s20, %s2161_s20 }
  0x1e   :  { %p2168_p0 = por %p2167_p13, %p2166_p12 }
  0x20   :  { %p2169_p1 = pnand %p2168_p0, %p2162_p11 }
  0x22   :  { %2172 = shalt.err (!%p2169_p1)
}
  0x23   :  { %26 = dma.hbm_to_vmem [thread:$0]  %s2551_s0, 256, %s2296_s24, [#allocation3], %s2249_s9, %s2249_s9, %s2250_s10  }
  0x24   :  { %s2251_s22 = smov [#allocation7]   ;;  %s2252_s25 = smov [#allocation8]  }
  0x25   :  { %s44_s23 = sshll.u32 %s2251_s22, 4  ;;  %s56_s26 = sshll.u32 %s2252_s25, 4  ;;  %s45_s23 = int_to_ptr.vmem [resolvable:$true] %s44_s23  ;;  %s2333_s26 = int_to_ptr.vmem [resolvable:$true] %s56_s26 }
  0x26   :  { %s2173_s29 = scalar_lea.hbm %s2553_s2, 256 }
  0x27   :  { %p2174_p2 = scmp.ne.s32.totalorder %s2553_s2, %s2173_s29  ;;  %p2177_p3 = scmp.lt.u32.totalorder %s2173_s29, %s2553_s2 }
  0x29   :  { %p2179_p4 = pnand %p2177_p3, %p2174_p2 }
  0x2b   :  { %2182 = shalt.err (!%p2179_p4)
}
  0x2c   :  { %s2183_s0 = scalar_lea.vmem %s45_s23, 256  ;;  %p2188_p6 = scmp.lt.s32.totalorder %s45_s23, %s45_s23 }
  0x2d   :  { %p2184_p5 = scmp.ne.s32.totalorder %s45_s23, %s2183_s0  ;;  %p2189_p7 = scmp.lt.s32.totalorder %s2183_s0, %s2183_s0 }
  0x2f   :  { %p2190_p8 = por %p2189_p7, %p2188_p6 }
  0x31   :  { %p2191_p9 = pnand %p2190_p8, %p2184_p5 }
  0x33   :  { %2194 = shalt.err (!%p2191_p9)
}
  0x34   :  { %50 = dma.hbm_to_vmem [thread:$0]  %s2553_s2, 256, %s45_s23, [#allocation6], %s2249_s9, %s2249_s9, %s2250_s10  }
  0x35   :  { %s2195_s15 = scalar_lea.hbm %s2554_s3, 2048 }
  0x36   :  { %p2196_p10 = scmp.ne.s32.totalorder %s2554_s3, %s2195_s15  ;;  %p2199_p11 = scmp.lt.u32.totalorder %s2195_s15, %s2554_s3 }
  0x38   :  { %p2201_p12 = pnand %p2199_p11, %p2196_p10 }
  0x3a   :  { %2204 = shalt.err (!%p2201_p12)
}
  0x3b   :  { %s2205_s20 = scalar_lea.vmem %s2333_s26, 2048  ;;  %p2210_p0 = scmp.lt.s32.totalorder %s2333_s26, %s2333_s26 }
  0x3c   :  { %p2206_p13 = scmp.ne.s32.totalorder %s2333_s26, %s2205_s20  ;;  %p2211_p1 = scmp.lt.s32.totalorder %s2205_s20, %s2205_s20 }
  0x3e   :  { %p2212_p2 = por %p2211_p1, %p2210_p0 }
  0x40   :  { %p2213_p3 = pnand %p2212_p2, %p2206_p13 }
  0x42   :  { %2216 = shalt.err (!%p2213_p3)
}
  0x43   :  { %62 = dma.hbm_to_vmem [thread:$0]  %s2554_s3, 2048, %s2333_s26, [#allocation9], %s2249_s9, %s2249_s9, %s2250_s10  }
  0x44   :  { %2239 = dma.done.wait [#allocation3], 256  }
  0x45   :  { %2240 = vsyncadd [#allocation3], 4294967040 }
  0x46   :  { %2241 = dma.done.wait [#allocation6], 512  }
  0x47   :  { %2242 = vsyncadd [#allocation6], 4294966784 }
  0x48   :  { %2243 = dma.done.wait [#allocation9], 2048  }
  0x49   :  { %2244 = vsyncadd [#allocation9], 4294965248  ;;  %v177_v0 = vld [vmem:[#allocation8 + $0x20] sm:$0xff]  ;;  %v178_v1 = vld [vmem:[#allocation8 + $0x28] sm:$0xff]  ;;  %vm94_vm0 = vcmask 261120   ;;  %v2253_v24 = vmov 0.0  }
  0x4a   :  { %v85_v2 = vld [vmem:[#allocation8] sm:$0xff]  ;;  %v2059_v3 = vpack.c.bf16 %v178_v1, %v177_v0  ;;  %v86_v4 = vld [vmem:[#allocation8 + $0x8] sm:$0xff]  ;;  %v179_v5 = vld [vmem:[#allocation8 + $0x30] sm:$0xff]  ;;  %vm2254_vm1 = vmmov 0   ;;  %vm406_vm2 = vcmask 64512   ;;  %s2255_s25 = smov 120  }
  0x4b   :  { %v180_v6 = vld [vmem:[#allocation8 + $0x38] sm:$0xff]  ;;  %v2051_v7 = vpack.c.bf16 %v86_v4, %v85_v2  ;;  %v87_v9 = vld [vmem:[#allocation8 + $0x10] sm:$0xff]  ;;  %v81_v11 = vld [vmem:[#allocation5] sm:$0xff]  ;;  %s2256_s26 = smov 112   ;;  %s2257_s27 = smov 104   ;;  %vm1717_vm4 = vcmask 130048  }
  0x4c   :  { %v2063_v8 = vpack.c.bf16 %v180_v6, %v179_v5  ;;  %v88_v10 = vld [vmem:[#allocation8 + $0x18] sm:$0xff]  ;;  %2060 = vmatprep.subr.bf16.mxu1 %v2059_v3  ;;  %1946 = vmatprep.mubr.msk.f32.mxu1 %vm94_vm0, %v81_v11  ;;  %v79_v13 = vld [vmem:[#allocation2] sm:$0xff]  ;;  %v268_v14 = vld [vmem:[#allocation8 + $0x40] sm:$0xff]  ;;  %s2259_s8 = smov 24   ;;  %vm1720_vm5 = vcmask 195584   ;;  %s2260_s24 = smov [#allocation10]  }
  0x4d   :  { %v2055_v12 = vpack.c.bf16 %v88_v10, %v87_v9  ;;  %2062 = vmatpush3.bf16.msra.mxu1 %v2059_v3  ;;  %2052 = vmatprep.subr.bf16.mxu0 %v2051_v7  ;;  %v269_v15 = vld [vmem:[#allocation8 + $0x48] sm:$0xff]  ;;  %v270_v17 = vld [vmem:[#allocation8 + $0x50] sm:$0xff]  ;;  %v271_v18 = vld [vmem:[#allocation8 + $0x58] sm:$0xff]  ;;  %s1821_s12 = sshll.u32 %s2260_s24, 4  ;;  %s1822_s12 = int_to_ptr.vmem [resolvable:$true] %s1821_s12 }
  0x4e   :  { %2054 = vmatpush3.bf16.msra.mxu0 %v2051_v7  ;;  %2064 = vmatprep.subr.bf16.mxu1 %v2063_v8  ;;  %v2067_v16 = vpack.c.bf16 %v269_v15, %v268_v14  ;;  %v82_v19 = vld [vmem:[#allocation5 + $0x8] sm:$0xff]  ;;  %v80_v20 = vld [vmem:[#allocation2 + $0x8] sm:$0xff]  ;;  %v2071_v21 = vpack.c.bf16 %v271_v18, %v270_v17  ;;  %v83_v22 = vld [vmem:[#allocation7] sm:$0xff]  ;;  %s2217_s13 = scalar_lea.vmem %s1822_s12, 256  ;;  %p2222_p5 = scmp.lt.s32.totalorder %s1822_s12, %s1822_s12 }
  0x4f   :  { %2056 = vmatprep.subr.bf16.mxu0 %v2055_v12  ;;  %1935 = vmatprep.mubr.msk.f32.mxu0 %vm94_vm0, %v79_v13  ;;  %v84_v23 = vld [vmem:[#allocation7 + $0x8] sm:$0xff]  ;;  %v1838_v25 = vld [vmem:[%s2555_s4 + $0x1] ss:$0 sm:$0xff]  ;;  %v1835_v27 = vld [vmem:[%s2555_s4] ss:$0 sm:$0xff]  ;;  %p2218_p4 = scmp.ne.s32.totalorder %s1822_s12, %s2217_s13  ;;  %p2223_p6 = scmp.lt.s32.totalorder %s2217_s13, %s2217_s13 }
  0x50   :  { %v1841_v37 = vld [vmem:[%s2555_s4 + $0x2] ss:$0 sm:$0xff] }
  0x51   :  { %2066 = vmatpush3.bf16.msra.mxu1 %v2063_v8  ;;  %v1007_v52 = vld [vmem:[%s2556_s5] sm:$0xff]  ;;  %s2258_s5 = smov 16   ;;  %p2224_p7 = por %p2223_p6, %p2222_p5 }
  0x52   :  { %2058 = vmatpush3.bf16.msra.mxu0 %v2055_v12  ;;  %1960 = vmatprep.subr.mxu1 %v2253_v24  ;;  %vm1008_vm3 = vcmp.eq.f32.partialorder %v1007_v52, 0.0 }
  0x53   :  { %2068 = vmatprep.subr.bf16.mxu0 %v2067_v16  ;;  %p2225_p8 = pnand %p2224_p7, %p2218_p4 }
  0x54   :  { %1947 = vmatmul.mubr.msk.f32.vlgmr.msra.gmra.mrb[0].mxu1 %vm94_vm0, %v82_v19 }
  0x55   :  { %1936 = vmatmul.mubr.msk.f32.vlgmr.msra.gmra.mrb[0].mxu0 %vm94_vm0, %v80_v20  ;;  %1962 = vmatprep.mubr.msk.f32.mxu1 %vm2254_vm1, %v2253_v24 }
  0x56   :  { %2070 = vmatpush3.bf16.msra.mxu0 %v2067_v16  ;;  %1957 = vmatprep.mubr.msk.f32.mxu0 %vm94_vm0, %v83_v22 }
  0x57   :  { %2072 = vmatprep.subr.bf16.mxu0 %v2071_v21 }
  0x5a   :  { %2074 = vmatpush3.bf16.msra.mxu0 %v2071_v21 }
  0x5b   :  { %1980 = vmatprep.subr.mxu0 %v2253_v24 }
  0x5d   :  { %1958 = vmatmul.mubr.msk.f32.vlgmr.msra.gmra.mrb[2].mxu0 %vm94_vm0, %v84_v23 }
  0x5e   :  { %1982 = vmatprep.mubr.msk.f32.mxu0 %vm2254_vm1, %v2253_v24 }
 0x127   :  { %v1948_v26 = vpop.f32.mrb[0].mxu1 }
 0x128   :  { %v264_v28 = vadd.f32 %v1948_v26, %v1838_v25  ;;  %v258_v29 = vpop.f32.mrb[1].mxu1  ;;  %v1937_v30 = vpop.f32.mrb[0].mxu0 }
 0x129   :  { %v259_v31 = vadd.f32 %v1838_v25, %v258_v29  ;;  %v167_v32 = vpop.f32.mrb[1].mxu0  ;;  %v173_v33 = vadd.f32 %v1937_v30, %v1835_v27 }
 0x12a   :  { %376 = vrot.lane.b32.xlu1 %v264_v28, %s2255_s25  ;;  %v168_v34 = vadd.f32 %v1835_v27, %v167_v32 }
 0x12b   :  { %374 = vrot.lane.b32.xlu0 %v259_v31, %s2255_s25  ;;  %1961 = vmatpush3.xpose.msk.msra.mxu1 %vm406_vm2, %v259_v31 }
 0x12c   :  { %1965 = vmatprep.subr.mxu1 %v2253_v24 }
 0x12e   :  { %362 = vrot.lane.b32.xlu1 %v173_v33, %s2255_s25  ;;  %1963 = vmatmul.mubr.msk.f32.vlgmr.msra.gmra.mrb[2].mxu1 %vm406_vm2, %v168_v34 }
 0x12f   :  { %360 = vrot.lane.b32.xlu0 %v168_v34, %s2255_s25  ;;  %1966 = vmatpush3.xpose.msk.msra.mxu1 %vm406_vm2, %v264_v28 }
 0x130   :  { %1967 = vmatprep.mubr.msk.f32.mxu1 %vm2254_vm1, %v2253_v24  ;;  %1970 = vmatprep.subr.mxu1 %v2253_v24  ;;  %v1959_v35 = vpop.f32.mrb[2].mxu0 }
 0x131   :  { %v349_v36 = vpop.f32.mrb[3].mxu0  ;;  %v2408_v38 = vadd.f32 %v1959_v35, %v1841_v37 }
 0x132   :  { %380 = vrot.lane.b32.xlu1 %v264_v28, %s2256_s26  ;;  %1968 = vmatmul.mubr.msk.f32.vlgmr.msra.gmra.mrb[4].mxu1 %vm406_vm2, %v173_v33  ;;  %v2412_v39 = vadd.f32 %v1841_v37, %v349_v36 }
 0x133   :  { %378 = vrot.lane.b32.xlu0 %v259_v31, %s2256_s26  ;;  %1972 = vmatprep.mubr.msk.f32.mxu1 %vm2254_vm1, %v2253_v24 }
 0x136   :  { %366 = vrot.lane.b32.xlu1 %v173_v33, %s2256_s26 }
 0x137   :  { %364 = vrot.lane.b32.xlu0 %v168_v34, %s2256_s26 }
 0x13a   :  { %384 = vrot.lane.b32.xlu1 %v264_v28, %s2257_s27 }
 0x13b   :  { %382 = vrot.lane.b32.xlu0 %v259_v31, %s2257_s27 }
 0x13e   :  { %370 = vrot.lane.b32.xlu1 %v173_v33, %s2257_s27 }
 0x13f   :  { %368 = vrot.lane.b32.xlu0 %v168_v34, %s2257_s27 }
 0x142   :  { %396 = vrot.lane.b32.xlu1 %v2408_v38, %s2256_s26 }
 0x143   :  { %390 = vrot.lane.b32.xlu0 %v2408_v38, %s2255_s25 }
 0x146   :  { %388 = vrot.lane.b32.xlu1 %v2412_v39, %s2255_s25 }
 0x14a   :  { %394 = vrot.lane.b32.xlu1 %v2412_v39, %s2256_s26 }
 0x19c   :  { %v377_v40 = vpop.permute.xlu1 %376 }
 0x19d   :  { %v375_v41 = vpop.permute.xlu0 %374 }
 0x19e   :  { %1971 = vmatpush3.xpose.msk.msra.mxu1 %vm406_vm2, %v375_v41 }
 0x19f   :  { %1975 = vmatprep.subr.mxu1 %v2253_v24 }
 0x1a0   :  { %v363_v42 = vpop.permute.xlu1 %362 }
 0x1a1   :  { %v361_v43 = vpop.permute.xlu0 %360 }
 0x1a2   :  { %1973 = vmatmul.mubr.msk.f32.vlgmr.msra.gmra.mrb[6].mxu1 %vm406_vm2, %v361_v43 }
 0x1a3   :  { %1976 = vmatpush3.xpose.msk.msra.mxu1 %vm406_vm2, %v377_v40  ;;  %1977 = vmatprep.mubr.msk.f32.mxu1 %vm2254_vm1, %v2253_v24 }
 0x1a4   :  { %v381_v44 = vpop.permute.xlu1 %380  ;;  %1985 = vmatprep.subr.mxu1 %v2253_v24 }
 0x1a5   :  { %v379_v45 = vpop.permute.xlu0 %378 }
 0x1a6   :  { %1978 = vmatmul.mubr.msk.f32.vlgmr.msra.gmra.mrb[8].mxu1 %vm406_vm2, %v363_v42  ;;  %1981 = vmatpush3.xpose.msk.msra.mxu0 %vm406_vm2, %v379_v45 }
 0x1a7   :  { %1986 = vmatpush3.xpose.msk.msra.mxu1 %vm406_vm2, %v381_v44  ;;  %1987 = vmatprep.mubr.msk.f32.mxu1 %vm2254_vm1, %v2253_v24 }
 0x1a8   :  { %v367_v46 = vpop.permute.xlu1 %366  ;;  %1995 = vmatprep.subr.mxu1 %v2253_v24  ;;  %1990 = vmatprep.subr.mxu0 %v2253_v24 }
 0x1a9   :  { %v365_v47 = vpop.permute.xlu0 %364 }
 0x1aa   :  { %1983 = vmatmul.mubr.msk.f32.vlgmr.msra.gmra.mrb[4].mxu0 %vm406_vm2, %v365_v47  ;;  %1988 = vmatmul.mubr.msk.f32.vlgmr.msra.gmra.mrb[10].mxu1 %vm406_vm2, %v367_v46 }
 0x1ab   :  { %1997 = vmatprep.mubr.msk.f32.mxu1 %vm2254_vm1, %v2253_v24  ;;  %1992 = vmatprep.mubr.msk.f32.mxu0 %vm2254_vm1, %v2253_v24 }
 0x1ac   :  { %v385_v48 = vpop.permute.xlu1 %384 }
 0x1ad   :  { %v383_v49 = vpop.permute.xlu0 %382  ;;  %1996 = vmatpush3.xpose.msk.msra.mxu1 %vm406_vm2, %v385_v48 }
 0x1ae   :  { %1991 = vmatpush3.xpose.msk.msra.mxu0 %vm406_vm2, %v383_v49  ;;  %2005 = vmatprep.subr.mxu1 %v2253_v24 }
 0x1af   :  { %2000 = vmatprep.subr.mxu0 %v2253_v24 }
 0x1b0   :  { %v371_v50 = vpop.permute.xlu1 %370 }
 0x1b1   :  { %v369_v51 = vpop.permute.xlu0 %368  ;;  %1998 = vmatmul.mubr.msk.f32.vlgmr.msra.gmra.mrb[12].mxu1 %vm406_vm2, %v371_v50 }
 0x1b2   :  { %1993 = vmatmul.mubr.msk.f32.vlgmr.msra.gmra.mrb[6].mxu0 %vm406_vm2, %v369_v51  ;;  %2006 = vmatpush3.msra.mxu1 %v2408_v38 }
 0x1b3   :  { %2001 = vmatpush3.msra.mxu0 %v2412_v39  ;;  %2002 = vmatprep.mubr.msk.f32.mxu0 %vm2254_vm1, %v2253_v24 }
 0x1b4   :  { %2007 = vmatprep.mubr.msk.f32.mxu1 %vm2254_vm1, %v2253_v24  ;;  %2010 = vmatprep.subr.mxu0 %v2253_v24  ;;  %v2468_v20 = vpop.permute.xlu1 %396 }
 0x1b5   :  { %2015 = vmatprep.subr.mxu1 %v2253_v24  ;;  %v391_v32 = vpop.permute.xlu0 %390 }
 0x1b8   :  { %v389_v31 = vpop.permute.xlu1 %388 }
 0x1bc   :  { %v395_v33 = vpop.permute.xlu1 %394 }
 0x201   :  { %v477_v53 = vpop.f32.mrb[2].mxu1 }
 0x202   :  { %v999_v54 = vmul.f32 0.35355338, %v477_v53  ;;  %v1964_v55 = vpop.f32.mrb[3].mxu1 }
 0x204   :  { %v1011_v56 = vsel %vm1008_vm3, -1e+09, %v999_v54 }
 0x205   :  { %v551_v57 = vpop.f32.mrb[4].mxu1  ;;  %v1019_v58 = vsel %vm406_vm2, %v1011_v56, -inf }
 0x206   :  { %v1000_v59 = vmul.f32 0.35355338, %v551_v57  ;;  %1020 = vmax.xlane.f32.xlu0 %v1019_v58  ;;  %v1969_v60 = vpop.f32.mrb[5].mxu1 }
 0x208   :  { %v1012_v61 = vsel %vm1008_vm3, -1e+09, %v1000_v59 }
 0x209   :  { %v1022_v62 = vsel %vm406_vm2, %v1012_v61, -inf }
 0x20a   :  { %1023 = vmax.xlane.f32.xlu1 %v1022_v62 }
 0x275   :  { %v625_v63 = vpop.f32.mrb[6].mxu1 }
 0x276   :  { %v1001_v0 = vmul.f32 0.35355338, %v625_v63  ;;  %v1974_v1 = vpop.f32.mrb[7].mxu1 }
 0x278   :  { %v1013_v2 = vsel %vm1008_vm3, -1e+09, %v1001_v0 }
 0x279   :  { %v699_v3 = vpop.f32.mrb[8].mxu1  ;;  %v1025_v4 = vsel %vm406_vm2, %v1013_v2, -inf }
 0x27a   :  { %v1002_v5 = vmul.f32 0.35355338, %v699_v3  ;;  %1026 = vmax.xlane.f32.xlu0 %v1025_v4  ;;  %v1979_v6 = vpop.f32.mrb[9].mxu1 }
 0x27c   :  { %v1014_v7 = vsel %vm1008_vm3, -1e+09, %v1002_v5 }
 0x27d   :  { %v773_v8 = vpop.f32.mrb[4].mxu0  ;;  %v847_v9 = vpop.f32.mrb[10].mxu1  ;;  %v1028_v10 = vsel %vm406_vm2, %v1014_v7, -inf }
 0x27e   :  { %v1003_v11 = vmul.f32 0.35355338, %v773_v8  ;;  %v1004_v12 = vmul.f32 0.35355338, %v847_v9  ;;  %v1984_v13 = vpop.f32.mrb[5].mxu0  ;;  %1029 = vmax.xlane.f32.xlu0 %v1028_v10  ;;  %v1989_v14 = vpop.f32.mrb[11].mxu1 }
 0x280   :  { %v1015_v15 = vsel %vm1008_vm3, -1e+09, %v1003_v11  ;;  %v1016_v16 = vsel %vm1008_vm3, -1e+09, %v1004_v12 }
 0x281   :  { %v1031_v17 = vsel %vm406_vm2, %v1015_v15, -inf  ;;  %v1034_v18 = vsel %vm406_vm2, %v1016_v16, -inf }
 0x282   :  { %1032 = vmax.xlane.f32.xlu1 %v1031_v17  ;;  %1035 = vmax.xlane.f32.xlu0 %v1034_v18 }
 0x284   :  { %v995_v19 = vpop.f32.mrb[12].mxu1 }
 0x285   :  { %v1006_v21 = vmul.f32 0.35355338, %v995_v19  ;;  %v921_v22 = vpop.f32.mrb[6].mxu0  ;;  %v1999_v23 = vpop.f32.mrb[13].mxu1  ;;  %v1724_v19 = vld [vmem:[#allocation8 + $0x60] sm:$0xff] }
 0x286   :  { %v1005_v25 = vmul.f32 0.35355338, %v921_v22  ;;  %v1994_v26 = vpop.f32.mrb[7].mxu0 }
 0x287   :  { %v1018_v27 = vsel %vm1008_vm3, -1e+09, %v1006_v21 }
 0x288   :  { %v1040_v28 = vsel %vm406_vm2, %v1018_v27, -inf  ;;  %v1017_v29 = vsel %vm1008_vm3, -1e+09, %v1005_v25 }
 0x289   :  { %1041 = vmax.xlane.f32.xlu0 %v1040_v28  ;;  %v1037_v30 = vsel %vm406_vm2, %v1017_v29, -inf  ;;  %v1726_v28 = vld [vmem:[#allocation8 + $0x70] sm:$0xff] }
 0x28a   :  { %1038 = vmax.xlane.f32.xlu1 %v1037_v30 }
 0x293   :  { %v1021_v34 = vpop.xlane.xlu0 %1020 }
 0x294   :  { %v1043_v35 = vsub.f32 %v1011_v56, %v1021_v34 }
 0x296   :  { %v1051_v36 = vmul.f32 1.442695, %v1043_v35 }
 0x297   :  { %v1024_v37 = vpop.xlane.xlu1 %1023 }
 0x298   :  { %2097 = vpow2.f32 %v1051_v36  ;;  %v1044_v40 = vsub.f32 %v1012_v61, %v1024_v37 }
 0x29a   :  { %v1053_v41 = vmul.f32 1.442695, %v1044_v40 }
 0x29b   :  { %402 = vrot.lane.b32.xlu1 %v2408_v38, %s2257_s27 }
 0x29c   :  { %2099 = vpow2.f32 %v1053_v41 }
 0x29f   :  { %400 = vrot.lane.b32.xlu0 %v2412_v39, %s2257_s27 }
 0x2a2   :  { %v2478_v42 = vpop.eup %2097 }
 0x2a3   :  { %2003 = vmatmul.mubr.msk.f32.vlgmr.msra.gmra.mrb[8].mxu0 %vm406_vm2, %v2478_v42  ;;  %v1067_v10 = vsel %vm406_vm2, %v2478_v42, 0.0 }
 0x2a4   :  { %2011 = vmatpush3.msra.mxu0 %v389_v31  ;;  %2012 = vmatprep.mubr.msk.f32.mxu0 %vm2254_vm1, %v2253_v24 }
 0x2a5   :  { %2020 = vmatprep.subr.mxu0 %v2253_v24 }
 0x2a6   :  { %v2485_v43 = vpop.eup %2099 }
 0x2a7   :  { %2008 = vmatmul.mubr.msk.f32.vlgmr.msra.gmra.mrb[14].mxu1 %vm406_vm2, %v2485_v43 }
 0x2a8   :  { %2016 = vmatpush3.msra.mxu1 %v391_v32  ;;  %2017 = vmatprep.mubr.msk.f32.mxu1 %vm2254_vm1, %v2253_v24 }
 0x2a9   :  { %2025 = vmatprep.subr.mxu1 %v2253_v24 }
 0x307   :  { %v1027_v38 = vpop.xlane.xlu0 %1026 }
 0x308   :  { %v1045_v39 = vsub.f32 %v1013_v2, %v1027_v38 }
 0x30a   :  { %v1055_v44 = vmul.f32 1.442695, %v1045_v39 }
 0x30b   :  { %v1030_v45 = vpop.xlane.xlu0 %1029 }
 0x30c   :  { %2101 = vpow2.f32 %v1055_v44  ;;  %v1046_v46 = vsub.f32 %v1014_v7, %v1030_v45 }
 0x30e   :  { %v1057_v47 = vmul.f32 1.442695, %v1046_v46 }
 0x30f   :  { %v1033_v48 = vpop.xlane.xlu1 %1032  ;;  %v1036_v49 = vpop.xlane.xlu0 %1035 }
 0x310   :  { %2103 = vpow2.f32 %v1057_v47  ;;  %v1047_v50 = vsub.f32 %v1015_v15, %v1033_v48  ;;  %v1048_v51 = vsub.f32 %v1016_v16, %v1036_v49 }
 0x312   :  { %v1059_v52 = vmul.f32 1.442695, %v1047_v50  ;;  %v1061_v53 = vmul.f32 1.442695, %v1048_v51 }
 0x314   :  { %2105 = vpow2.f32 %v1059_v52 }
 0x315   :  { %2107 = vpow2.f32 %v1061_v53 }
 0x316   :  { %v2102_v54 = vpop.eup %2101  ;;  %v1042_v55 = vpop.xlane.xlu0 %1041 }
 0x317   :  { %v1050_v56 = vsub.f32 %v1018_v27, %v1042_v55  ;;  %v1039_v57 = vpop.xlane.xlu1 %1038  ;;  %2013 = vmatmul.mubr.msk.f32.vlgmr.msra.gmra.mrb[10].mxu0 %vm406_vm2, %v2102_v54  ;;  %v1073_v58 = vsel %vm406_vm2, %v2102_v54, 0.0 }
 0x318   :  { %v1049_v59 = vsub.f32 %v1017_v29, %v1039_v57  ;;  %2021 = vmatpush3.msra.mxu0 %v395_v33  ;;  %1074 = vadd.xlane.f32.xlu0 %v1073_v58  ;;  %v1727_v29 = vld [vmem:[#allocation8 + $0x78] sm:$0xff] }
 0x319   :  { %v1065_v60 = vmul.f32 1.442695, %v1050_v56  ;;  %2022 = vmatprep.mubr.msk.f32.mxu0 %vm2254_vm1, %v2253_v24  ;;  %2030 = vmatprep.subr.mxu0 %v2253_v24  ;;  %v2079_v31 = vpack.c.bf16 %v1727_v29, %v1726_v28 }
 0x31a   :  { %v2104_v61 = vpop.eup %2103  ;;  %v1063_v62 = vmul.f32 1.442695, %v1049_v59  ;;  %v401_v2 = vpop.permute.xlu0 %400 }
 0x31b   :  { %2109 = vpow2.f32 %v1065_v60  ;;  %2018 = vmatmul.mubr.msk.f32.vlgmr.msra.gmra.mrb[16].mxu1 %vm406_vm2, %v2104_v61  ;;  %v1076_v63 = vsel %vm406_vm2, %v2104_v61, 0.0  ;;  %v403_v4 = vpop.permute.xlu1 %402 }
 0x31c   :  { %2111 = vpow2.f32 %v1063_v62  ;;  %2026 = vmatpush3.msra.mxu1 %v2468_v20  ;;  %1077 = vadd.xlane.f32.xlu1 %v1076_v63  ;;  %v1725_v20 = vld [vmem:[#allocation8 + $0x68] sm:$0xff] }
 0x31d   :  { %2027 = vmatprep.mubr.msk.f32.mxu1 %vm2254_vm1, %v2253_v24  ;;  %2035 = vmatprep.subr.mxu1 %v2253_v24  ;;  %v2075_v21 = vpack.c.bf16 %v1725_v20, %v1724_v19 }
 0x31e   :  { %v2106_v0 = vpop.eup %2105 }
 0x31f   :  { %v2108_v1 = vpop.eup %2107  ;;  %2023 = vmatmul.mubr.msk.f32.vlgmr.msra.gmra.mrb[12].mxu0 %vm406_vm2, %v2106_v0  ;;  %v1079_v3 = vsel %vm406_vm2, %v2106_v0, 0.0 }
 0x320   :  { %2028 = vmatmul.mubr.msk.f32.vlgmr.msra.gmra.mrb[18].mxu1 %vm406_vm2, %v2108_v1  ;;  %2031 = vmatpush3.msra.mxu0 %v401_v2  ;;  %v1082_v5 = vsel %vm406_vm2, %v2108_v1, 0.0 }
 0x321   :  { %2036 = vmatpush3.msra.mxu1 %v403_v4  ;;  %1080 = vadd.xlane.f32.xlu0 %v1079_v3 }
 0x322   :  { %2037 = vmatprep.mubr.msk.f32.mxu1 %vm2254_vm1, %v2253_v24  ;;  %2032 = vmatprep.mubr.msk.f32.mxu0 %vm2254_vm1, %v2253_v24  ;;  %v1070_v24 = vsel %vm406_vm2, %v2485_v43, 0.0 }
 0x323   :  { %2076 = vmatprep.subr.bf16.mxu0 %v2075_v21 }
 0x325   :  { %v2110_v6 = vpop.eup %2109  ;;  %1083 = vadd.xlane.f32.xlu0 %v1082_v5 }
 0x326   :  { %v2112_v7 = vpop.eup %2111  ;;  %2038 = vmatmul.mubr.msk.f32.vlgmr.msra.gmra.mrb[20].mxu1 %vm406_vm2, %v2110_v6  ;;  %v1088_v8 = vsel %vm406_vm2, %v2110_v6, 0.0  ;;  %v1868_v6 = vld [vmem:[%s2555_s4 + $0x3] ss:$0 sm:$0xff] }
 0x327   :  { %2033 = vmatmul.mubr.msk.f32.vlgmr.msra.gmra.mrb[14].mxu0 %vm406_vm2, %v2112_v7  ;;  %v1085_v9 = vsel %vm406_vm2, %v2112_v7, 0.0 }
 0x328   :  { %1086 = vadd.xlane.f32.xlu1 %v1085_v9  ;;  %2078 = vmatpush3.bf16.msra.mxu0 %v2075_v21 }
 0x329   :  { %1089 = vadd.xlane.f32.xlu0 %v1088_v8  ;;  %2080 = vmatprep.subr.bf16.mxu0 %v2079_v31 }
 0x32c   :  { %1068 = vadd.xlane.f32.xlu1 %v1067_v10  ;;  %2082 = vmatpush3.bf16.msra.mxu0 %v2079_v31 }
 0x32d   :  { %1071 = vadd.xlane.f32.xlu0 %v1070_v24 }
 0x376   :  { %v2519_v11 = vpop.f32.mrb[8].mxu0 }
 0x377   :  { %v2004_v12 = vpop.f32.mrb[9].mxu0 }
 0x37a   :  { %v2521_v13 = vpop.f32.mrb[14].mxu1 }
 0x37b   :  { %v2009_v14 = vpop.f32.mrb[15].mxu1 }
 0x3a5   :  { %v1075_v15 = vpop.xlane.xlu0 %1074 }
 0x3a6   :  { %2113 = vrcp.f32 %v1075_v15 }
 0x3a9   :  { %v1078_v17 = vpop.xlane.xlu1 %1077 }
 0x3aa   :  { %2115 = vrcp.f32 %v1078_v17 }
 0x3ae   :  { %v1081_v16 = vpop.xlane.xlu0 %1080 }
 0x3af   :  { %2117 = vrcp.f32 %v1081_v16 }
 0x3b0   :  { %v2114_v22 = vpop.eup %2113 }
 0x3b2   :  { %v1084_v18 = vpop.xlane.xlu0 %1083 }
 0x3b3   :  { %2119 = vrcp.f32 %v1084_v18 }
 0x3b4   :  { %v2116_v32 = vpop.eup %2115 }
 0x3b5   :  { %v1087_v30 = vpop.xlane.xlu1 %1086 }
 0x3b6   :  { %v1090_v27 = vpop.xlane.xlu0 %1089 }
 0x3b7   :  { %2121 = vrcp.f32 %v1090_v27 }
 0x3b8   :  { %2123 = vrcp.f32 %v1087_v30 }
 0x3b9   :  { %v2118_v36 = vpop.eup %2117  ;;  %v1069_v52 = vpop.xlane.xlu1 %1068 }
 0x3ba   :  { %v1072_v53 = vpop.xlane.xlu0 %1071  ;;  %2125 = vrcp.f32 %v1069_v52 }
 0x3bb   :  { %2127 = vrcp.f32 %v1072_v53 }
 0x3bd   :  { %v2120_v38 = vpop.eup %2119 }
 0x3c1   :  { %v2122_v44 = vpop.eup %2121 }
 0x3c2   :  { %v2124_v46 = vpop.eup %2123 }
 0x3c4   :  { %v2126_v56 = vpop.eup %2125 }
 0x3c5   :  { %v2128_v57 = vpop.eup %2127  ;;  %v1683_v60 = vmul.f32 %v2126_v56, %v2519_v11 }
 0x3c6   :  { %v1684_v61 = vmul.f32 %v2128_v57, %v2521_v13 }
 0x3ea   :  { %v1306_v23 = vpop.f32.mrb[10].mxu0 }
 0x3eb   :  { %v1685_v25 = vmul.f32 %v2114_v22, %v1306_v23  ;;  %v2014_v26 = vpop.f32.mrb[11].mxu0 }
 0x3ed   :  { %1693 = vrot.lane.b32.xlu1 %v1685_v25, %s2250_s10 }
 0x3ee   :  { %v1379_v33 = vpop.f32.mrb[16].mxu1 }
 0x3ef   :  { %v1686_v34 = vmul.f32 %v2116_v32, %v1379_v33  ;;  %v2019_v35 = vpop.f32.mrb[17].mxu1 }
 0x3f1   :  { %1695 = vrot.lane.b32.xlu0 %v1686_v34, %s2250_s10 }
 0x3f2   :  { %v1452_v37 = vpop.f32.mrb[12].mxu0 }
 0x3f3   :  { %v1687_v40 = vmul.f32 %v2118_v36, %v1452_v37  ;;  %v1525_v41 = vpop.f32.mrb[18].mxu1  ;;  %v2024_v42 = vpop.f32.mrb[13].mxu0 }
 0x3f4   :  { %v2029_v43 = vpop.f32.mrb[19].mxu1  ;;  %v1688_v39 = vmul.f32 %v2120_v38, %v1525_v41 }
 0x3f5   :  { %1701 = vrot.lane.b32.xlu1 %v1687_v40, %s2258_s5 }
 0x3f9   :  { %1703 = vrot.lane.b32.xlu1 %v1688_v39, %s2258_s5  ;;  %v1671_v45 = vpop.f32.mrb[20].mxu1 }
 0x3fa   :  { %v1690_v47 = vmul.f32 %v2122_v44, %v1671_v45  ;;  %v1598_v48 = vpop.f32.mrb[14].mxu0  ;;  %v2039_v49 = vpop.f32.mrb[21].mxu1 }
 0x3fb   :  { %v1689_v50 = vmul.f32 %v2124_v46, %v1598_v48  ;;  %v2034_v51 = vpop.f32.mrb[15].mxu0 }
 0x3fd   :  { %1709 = vrot.lane.b32.xlu0 %v1689_v50, %s2259_s8  ;;  %1711 = vrot.lane.b32.xlu1 %v1690_v47, %s2259_s8 }
 0x45f   :  { %v1694_v54 = vpop.permute.xlu1 %1693 }
 0x460   :  { %v1715_v62 = vsel %vm406_vm2, %v1683_v60, %v1694_v54 }
 0x463   :  { %v1696_v58 = vpop.permute.xlu0 %1695 }
 0x464   :  { %v1716_v63 = vsel %vm406_vm2, %v1684_v61, %v1696_v58 }
 0x467   :  { %v1702_v55 = vpop.permute.xlu1 %1701 }
 0x468   :  { %v1718_v0 = vsel %vm1717_vm4, %v1715_v62, %v1702_v55 }
 0x46b   :  { %v1704_v59 = vpop.permute.xlu1 %1703 }
 0x46c   :  { %v1719_v1 = vsel %vm1717_vm4, %v1716_v63, %v1704_v59 }
 0x46f   :  { %v1710_v2 = vpop.permute.xlu0 %1709  ;;  %v1712_v3 = vpop.permute.xlu1 %1711 }
 0x470   :  { %v1721_v4 = vsel %vm1720_vm5, %v1718_v0, %v1710_v2  ;;  %v1722_v5 = vsel %vm1720_vm5, %v1719_v1, %v1712_v3 }
 0x471   :  { %2048 = vmatprep.mubr.msk.f32.mxu0 %vm94_vm0, %v1721_v4 }
 0x472   :  { %2049 = vmatmul.mubr.msk.f32.vlgmr.msra.gmra.mrb[16].mxu0 %vm94_vm0, %v1722_v5 }
 0x545   :  { %v2050_v7 = vpop.f32.mrb[16].mxu0 }
 0x546   :  { %v1811_v8 = vadd.f32 %v2050_v7, %v1868_v6  ;;  %v1805_v9 = vpop.f32.mrb[17].mxu0 }
 0x547   :  { %v1806_v10 = vadd.f32 %v1868_v6, %v1805_v9 }
 0x548   :  { %1815 = vst.msk [vmem:[#allocation10 + $0x8] sm:$0xff] %vm94_vm0, %v1811_v8 }
 0x549   :  { %1814 = vst.msk [vmem:[#allocation10] sm:$0xff] %vm94_vm0, %v1806_v10 }
 0x54a   :  { %2228 = shalt.err (!%p2225_p8)
}
 0x54b   :  { %s2229_s15 = scalar_lea.hbm %s2557_s6, 256 }
 0x54c   :  { %p2230_p9 = scmp.ne.s32.totalorder %s2557_s6, %s2229_s15  ;;  %p2233_p10 = scmp.lt.u32.totalorder %s2229_s15, %s2557_s6 }
 0x54e   :  { %p2235_p11 = pnand %p2233_p10, %p2230_p9 }
 0x550   :  { %2238 = shalt.err (!%p2235_p11)
}
 0x551   :  { %1827 = dma.vmem_to_hbm [thread:$0]  %s1822_s12, 256, %s2557_s6, [#allocation4], %s2249_s9, %s2249_s9, %s2250_s10  }
 0x552   :  { %2245 = dma.done.wait [#allocation4], 256  }
 0x553   :  { %2246 = vsyncadd [#allocation4], 4294967040 }
 0x554   :  { %1831 = vsyncpa [#allocation3], 1 }
 0x555   :  { %1832 = vsyncpa [#allocation6], 1 }
 0x556   :  { %1833 = vsyncpa [#allocation9], 1 }
 0x557   :  { %1834 = vsyncpa [#allocation4], 1 }

</bundles_post_ra>
